<compile_context>
chip_gen: v6e
topology: v6e:2x2x1
jax: 0.10.0
libtpu: 0.0.40
codegen_flags: <defaults>
</compile_context>

<pallas_src>
import functools
from typing import NamedTuple

import jax
import jax.numpy as jnp
from jax import lax
from jax.experimental import pallas as pl
from jax.experimental.pallas import tpu as pltpu


def _round_up(x, m):
    return ((x + m - 1) // m) * m


# ---------------------------------------------------------------------------
# Hardware introspection (generation-aware tiling / VMEM budget).
# ---------------------------------------------------------------------------

def _hw_info():
    """Returns (vmem_capacity_bytes, wide_mxu, two_tensorcores)."""
    kind = ""
    try:
        kind = jax.devices()[0].device_kind.lower()
    except Exception:
        pass
    two_tc = "v7" in kind                      # v7x: 2 TensorCores per chip
    wide_mxu = any(t in kind for t in ("v6", "v7", "v5p"))   # 256-wide MXU
    vmem_cap = (64 << 20) if two_tc else (128 << 20)         # conservative default
    try:
        info = pltpu.get_tpu_info()
        cap = getattr(info, "vmem_capacity_bytes", None)
        if cap:
            vmem_cap = int(cap)
    except Exception:
        pass
    return vmem_cap, wide_mxu, two_tc


def _pad_feature_dim(d, wide_mxu):
    """Pad a contraction/output feature dim to full MXU tiles (128, or 256 on
    v6e/v7x when the real dim is >=256 and the extra padding is <=15%)."""
    p = _round_up(d, 128)
    if wide_mxu and d >= 256:
        p256 = _round_up(d, 256)
        if p256 == p or p256 <= int(d * 1.15):
            p = p256
    return p


# ---------------------------------------------------------------------------
# Parameter preparation (hoisted out of the per-call forward).
# ---------------------------------------------------------------------------

class PreparedParams(NamedTuple):
    w_in: jax.Array      # (D_pad, H_pad)     bf16
    b_in: jax.Array      # (1, H_pad)         f32
    w_res: jax.Array     # (L, H_pad, H_pad)  bf16
    b_res: jax.Array     # (L, 1, H_pad)      f32
    w_out: jax.Array     # (H_pad, C_pad)     bf16
    b_out: jax.Array     # (1, C_pad)         f32
    input_dim: int
    num_hidden: int
    num_classes: int
    num_layers: int


def prepare_params(params, num_layers):
    """Pads feature dims to MXU tiles and casts matmul operands to bf16 ONCE.
    Call this at init and reuse the result for every forward call."""
    w_in, b_in, w_res, b_res, w_out, b_out = params
    assert num_layers >= 1
    D, H = w_in.shape
    C = w_out.shape[1]
    _, wide_mxu, _ = _hw_info()
    D_pad = _pad_feature_dim(D, wide_mxu)
    H_pad = _pad_feature_dim(H, wide_mxu)
    C_pad = _pad_feature_dim(C, wide_mxu)

    # Zero-padding is numerically a no-op through every matmul / bias / relu.
    w_in_p = jnp.pad(w_in, ((0, D_pad - D), (0, H_pad - H))).astype(jnp.bfloat16)
    b_in_p = jnp.pad(jnp.reshape(b_in, (1, H)),
                     ((0, 0), (0, H_pad - H))).astype(jnp.float32)
    w_res_p = jnp.pad(w_res, ((0, 0), (0, H_pad - H), (0, H_pad - H))
                      ).astype(jnp.bfloat16)
    b_res_p = jnp.pad(jnp.reshape(b_res, (num_layers, 1, H)),
                      ((0, 0), (0, 0), (0, H_pad - H))).astype(jnp.float32)
    w_out_p = jnp.pad(w_out, ((0, H_pad - H), (0, C_pad - C))).astype(jnp.bfloat16)
    b_out_p = jnp.pad(jnp.reshape(b_out, (1, C)),
                      ((0, 0), (0, C_pad - C))).astype(jnp.float32)

    prepared = PreparedParams(w_in_p, b_in_p, w_res_p, b_res_p, w_out_p, b_out_p,
                              D, H, C, num_layers)
    jax.block_until_ready((w_in_p, b_in_p, w_res_p, b_res_p, w_out_p, b_out_p))
    return prepared


# ---------------------------------------------------------------------------
# Kernels.
# ---------------------------------------------------------------------------

def _resnet_kernel_resident(num_layers, unroll,
                            x_ref, w_in_ref, b_in_ref,
                            w_res_ref, b_res_ref,
                            w_out_ref, b_out_ref,
                            out_ref,
                            h_ref):
    # Input layer + relu (bf16 MXU operands, f32 accumulation / elementwise).
    h0 = jnp.dot(x_ref[...], w_in_ref[...], preferred_element_type=jnp.float32)
    h_ref[...] = jnp.maximum(h0 + b_in_ref[...], 0.0)

    def layer_body(i, carry):
        h = h_ref[...]
        r = jnp.dot(h.astype(jnp.bfloat16), w_res_ref[i],
                    preferred_element_type=jnp.float32)
        r = jnp.maximum(r + b_res_ref[i], 0.0)
        # F.dropout(training=False) is the identity -> no-op in eval mode.
        h_ref[...] = h + r
        return carry

    # Partial unroll so the VPU epilogue overlaps MXU pops without blowing up
    # instruction memory at large depth.
    lax.fori_loop(0, num_layers, layer_body, 0, unroll=unroll)

    # Classifier: lane-dense (C padded) matmul + unmasked store.
    logits = jnp.dot(h_ref[...].astype(jnp.bfloat16), w_out_ref[...],
                     preferred_element_type=jnp.float32)
    out_ref[...] = (logits + b_out_ref[...]).astype(out_ref.dtype)


def _resnet_kernel_streaming(num_layers,
                             x_ref, w_in_ref, b_in_ref,
                             w_res_hbm, b_res_ref,
                             w_out_ref, b_out_ref,
                             out_ref,
                             h_ref, w_buf, sem):
    # Streaming variant for large L*H: w_res stays in HBM; one (H,H) layer
    # slice is double-buffered through VMEM with manual DMA.
    h0 = jnp.dot(x_ref[...], w_in_ref[...], preferred_element_type=jnp.float32)
    h_ref[...] = jnp.maximum(h0 + b_in_ref[...], 0.0)

    # Prime: fetch layer 0's weights into slot 0.
    pltpu.make_async_copy(w_res_hbm.at[0], w_buf.at[0], sem.at[0]).start()

    def layer_body(i, carry):
        slot = i % 2
        # Wait for layer i's weights (shape/semaphore define the wait).
        pltpu.make_async_copy(w_res_hbm.at[0], w_buf.at[slot],
                              sem.at[slot]).wait()

        # Prefetch layer i+1 while layer i's matmul runs.
        @pl.when(i + 1 < num_layers)
        def _():
            pltpu.make_async_copy(w_res_hbm.at[i + 1], w_buf.at[1 - slot],
                                  sem.at[1 - slot]).start()

        h = h_ref[...]
        r = jnp.dot(h.astype(jnp.bfloat16), w_buf[slot],
                    preferred_element_type=jnp.float32)
        r = jnp.maximum(r + b_res_ref[i], 0.0)
        h_ref[...] = h + r
        return carry

    lax.fori_loop(0, num_layers, layer_body, 0)

    logits = jnp.dot(h_ref[...].astype(jnp.bfloat16), w_out_ref[...],
                     preferred_element_type=jnp.float32)
    out_ref[...] = (logits + b_out_ref[...]).astype(out_ref.dtype)


# ---------------------------------------------------------------------------
# Forward wrapper.
# ---------------------------------------------------------------------------

@functools.partial(jax.jit, static_argnames=("num_layers", "num_classes", "out_dtype"))
def _forward_impl(x, w_in, b_in, w_res, b_res, w_out, b_out, *,
                  num_layers, num_classes, out_dtype):
    B, D = x.shape
    D_pad, H_pad = w_in.shape
    C_pad = w_out.shape[1]
    L = num_layers
    C = num_classes
    out_bytes = jnp.dtype(out_dtype).itemsize

    vmem_cap, wide_mxu, two_tc = _hw_info()

    # --- batch tile ---------------------------------------------------------
    # 256 matches the 256-wide MXU M dim on v6e/v7x; 128 is enough on v5e.
    tb_base = 256 if wide_mxu else 128
    TB = min(tb_base, _round_up(B, 16))            # bf16 sublane packing = 16
    if two_tc and B > 16:
        # v7x: guarantee >=2 grid steps so both TensorCores get work.
        while TB > 16 and _round_up(B, TB) // TB < 2:
            TB = max(16, _round_up(TB // 2, 16))
    B_pad = _round_up(B, TB)
    grid_steps = B_pad // TB

    # --- VMEM accounting (Buffered(1) single-buffers constant weight blocks)
    w_in_b = D_pad * H_pad * 2
    w_res_b = L * H_pad * H_pad * 2
    w_out_b = H_pad * C_pad * 2
    bias_b = (H_pad + L * H_pad + C_pad) * 4
    x_tiles_b = 2 * TB * D_pad * 2                 # double-buffered x tile
    out_tiles_b = 2 * TB * C_pad * out_bytes       # double-buffered out tile
    h_scratch_b = TB * H_pad * 4
    resident_need = (w_in_b + w_res_b + w_out_b + bias_b +
                     x_tiles_b + out_tiles_b + h_scratch_b)
    stream_need = (w_in_b + 2 * H_pad * H_pad * 2 + w_out_b + bias_b +
                   x_tiles_b + out_tiles_b + h_scratch_b)

    budget = int(vmem_cap * 0.9)                   # generation-aware cap
    use_streaming = (resident_need + (2 << 20)) > budget
    need = stream_need if use_streaming else resident_need
    vmem_limit = int(min(max(need + (4 << 20), 16 << 20), budget))

    # --- cost estimate for XLA's scheduler ----------------------------------
    flops = 2 * B_pad * (D_pad * H_pad + L * H_pad * H_pad + H_pad * C_pad)
    bytes_accessed = (B_pad * D_pad * 2 + w_in_b + w_res_b + w_out_b + bias_b +
                      B_pad * C_pad * out_bytes)
    cost = pl.CostEstimate(flops=flops, transcendentals=0,
                           bytes_accessed=bytes_accessed)

    # --- specs ---------------------------------------------------------------
    x_p = jnp.pad(x, ((0, B_pad - B), (0, D_pad - D))).astype(jnp.bfloat16)

    single = pl.Buffered(1)    # constant index_map -> double-buffering is waste
    x_spec = pl.BlockSpec((TB, D_pad), lambda i: (i, 0))
    w_in_spec = pl.BlockSpec((D_pad, H_pad), lambda i: (0, 0), pipeline_mode=single)
    b_in_spec = pl.BlockSpec((1, H_pad), lambda i: (0, 0), pipeline_mode=single)
    b_res_spec = pl.BlockSpec((L, 1, H_pad), lambda i: (0, 0, 0),
                              pipeline_mode=single)
    w_out_spec = pl.BlockSpec((H_pad, C_pad), lambda i: (0, 0), pipeline_mode=single)
    b_out_spec = pl.BlockSpec((1, C_pad), lambda i: (0, 0), pipeline_mode=single)
    out_spec = pl.BlockSpec((TB, C_pad), lambda i: (i, 0))

    scratch = [pltpu.VMEM((TB, H_pad), jnp.float32)]   # hidden-state accumulator

    if use_streaming:
        # TODO(synk): when streaming, also grow TB (fewer grid steps) so the
        # per-step re-read of the whole weight stack is better amortized.
        kernel = functools.partial(_resnet_kernel_streaming, L)
        w_res_spec = pl.BlockSpec(memory_space=pl.ANY)          # stays in HBM
        scratch += [pltpu.VMEM((2, H_pad, H_pad), jnp.bfloat16),
                    pltpu.SemaphoreType.DMA((2,))]
    else:
        unroll = max(1, min(L, 4))
        kernel = functools.partial(_resnet_kernel_resident, L, unroll)
        w_res_spec = pl.BlockSpec((L, H_pad, H_pad), lambda i: (0, 0, 0),
                                  pipeline_mode=single)

    out_padded = pl.pallas_call(
        kernel,
        out_shape=jax.ShapeDtypeStruct((B_pad, C_pad), out_dtype),
        grid=(grid_steps,),
        in_specs=[x_spec, w_in_spec, b_in_spec, w_res_spec, b_res_spec,
                  w_out_spec, b_out_spec],
        out_specs=out_spec,
        scratch_shapes=scratch,
        compiler_params=pltpu.CompilerParams(
            dimension_semantics=("parallel",),
            vmem_limit_bytes=vmem_limit,
        ),
        cost_estimate=cost,
    )(x_p, w_in, b_in, w_res, b_res, w_out, b_out)

    return out_padded[:B, :C]


def deep_resnet_forward(x, prepared: PreparedParams, out_dtype=jnp.float32):
    """Forward pass. `prepared` must come from prepare_params() (padded bf16
    weights are built once there, not per call)."""
    return _forward_impl(
        x, prepared.w_in, prepared.b_in, prepared.w_res, prepared.b_res,
        prepared.w_out, prepared.b_out,
        num_layers=prepared.num_layers,
        num_classes=prepared.num_classes,
        out_dtype=out_dtype)


# ---------------------------------------------------------------------------
# Init + references.
# ---------------------------------------------------------------------------

def init_params(key, input_dim, num_hidden, num_layers, num_classes):
    """Deterministic init mimicking nn.Linear's U(-1/sqrt(fan_in), 1/sqrt(fan_in))."""
    keys = jax.random.split(key, 6)

    def uniform(k, shape, fan_in):
        bound = 1.0 / jnp.sqrt(fan_in)
        return jax.random.uniform(k, shape, jnp.float32, -bound, bound)

    # Stored as [in, out] (transposed relative to PyTorch's [out, in]).
    w_in = uniform(keys[0], (input_dim, num_hidden), input_dim)
    b_in = uniform(keys[1], (1, num_hidden), input_dim)
    w_res = uniform(keys[2], (num_layers, num_hidden, num_hidden), num_hidden)
    b_res = uniform(keys[3], (num_layers, 1, num_hidden), num_hidden)
    w_out = uniform(keys[4], (num_hidden, num_classes), num_hidden)
    b_out = uniform(keys[5], (1, num_classes), num_hidden)
    return w_in, b_in, w_res, b_res, w_out, b_out


def reference_forward(x, params, num_layers):
    """Pure-JAX f32 reference of the PyTorch forward (eval mode)."""
    w_in, b_in, w_res, b_res, w_out, b_out = params
    h = jnp.maximum(x @ w_in + b_in, 0.0)
    for i in range(num_layers):
        r = jnp.maximum(h @ w_res[i] + b_res[i], 0.0)
        h = h + r
    return h @ w_out + b_out


def reference_forward_bf16(x, params, num_layers):
    """Reference mirroring the kernel's mixed precision (bf16 matmul operands,
    f32 accumulation and elementwise math)."""
    w_in, b_in, w_res, b_res, w_out, b_out = params
    bf = jnp.bfloat16
    h = jnp.dot(x.astype(bf), w_in.astype(bf), preferred_element_type=jnp.float32)
    h = jnp.maximum(h + b_in, 0.0)
    for i in range(num_layers):
        r = jnp.dot(h.astype(bf), w_res[i].astype(bf),
                    preferred_element_type=jnp.float32)
        r = jnp.maximum(r + b_res[i], 0.0)
        h = h + r
    logits = jnp.dot(h.astype(bf), w_out.astype(bf),
                     preferred_element_type=jnp.float32)
    return logits + b_out


if __name__ == "__main__":
    # Small shapes consistent with the module's forward.
    B = 8            # batch
    INPUT_DIM = 16   # input_dim
    NUM_HIDDEN = 32  # num_hidden
    NUM_LAYERS = 3   # num_layers
    NUM_CLASSES = 1  # num_classes

    key = jax.random.PRNGKey(0)
    kx, kp = jax.random.split(key)
    x = jax.random.normal(kx, (B, INPUT_DIM), jnp.float32)
    params = init_params(kp, INPUT_DIM, NUM_HIDDEN, NUM_LAYERS, NUM_CLASSES)

    # Pad + cast weights ONCE (hoisted out of the per-call forward).
    prepared = prepare_params(params, NUM_LAYERS)

    logits = deep_resnet_forward(x, prepared)
    jax.block_until_ready(logits)
    assert logits.shape == (B, NUM_CLASSES)

    # Second call reuses the compiled kernel (jit cache) and the prepared params.
    logits2 = deep_resnet_forward(x, prepared)
    jax.block_until_ready(logits2)
    assert jnp.allclose(logits, logits2)

    # Tight check against a reference with identical mixed precision.
    ref_bf16 = reference_forward_bf16(x, params, NUM_LAYERS)
    assert jnp.allclose(logits, ref_bf16, atol=2e-3, rtol=2e-3), "bf16-ref mismatch"

    # Loose check against the pure-f32 PyTorch-equivalent reference.
    ref_f32 = reference_forward(x, params, NUM_LAYERS)
    assert jnp.allclose(logits, ref_f32, atol=1e-1, rtol=1e-1), "f32-ref mismatch"

    print("KERNEL_OK")
</pallas_src>

<mosaic_0001>
module attributes {stable_mosaic.version = 11 : i64} {
  func.func @_resnet_kernel_resident(%arg0: i32, %arg1: memref<16x128xbf16, #tpu.memory_space<vmem>>, %arg2: memref<128x128xbf16, #tpu.memory_space<vmem>>, %arg3: memref<1x128xf32, #tpu.memory_space<vmem>>, %arg4: memref<3x128x128xbf16, #tpu.memory_space<vmem>>, %arg5: memref<3x1x128xf32, #tpu.memory_space<vmem>>, %arg6: memref<128x128xbf16, #tpu.memory_space<vmem>>, %arg7: memref<1x128xf32, #tpu.memory_space<vmem>>, %arg8: memref<16x128xf32, #tpu.memory_space<vmem>>, %arg9: memref<16x128xf32, #tpu.memory_space<vmem>>) attributes {dimension_semantics = [#tpu.dimension_semantics<parallel>], iteration_bounds = array<i64: 1>, scalar_prefetch = 0 : i64, scratch_operands = 1 : i64, tpu.core_type = #tpu.core_type<tc>, window_params = [{transform_indices = @transform_0, window_bounds = array<i64: 16, 128>}, {pipeline_mode = #tpu.pipeline_mode<synchronous>, transform_indices = @transform_1, window_bounds = array<i64: 128, 128>}, {pipeline_mode = #tpu.pipeline_mode<synchronous>, transform_indices = @transform_2, window_bounds = array<i64: 1, 128>}, {pipeline_mode = #tpu.pipeline_mode<synchronous>, transform_indices = @transform_3, window_bounds = array<i64: 3, 128, 128>}, {pipeline_mode = #tpu.pipeline_mode<synchronous>, transform_indices = @transform_4, window_bounds = array<i64: 3, 1, 128>}, {pipeline_mode = #tpu.pipeline_mode<synchronous>, transform_indices = @transform_5, window_bounds = array<i64: 128, 128>}, {pipeline_mode = #tpu.pipeline_mode<synchronous>, transform_indices = @transform_6, window_bounds = array<i64: 1, 128>}, {transform_indices = @transform_7, window_bounds = array<i64: 16, 128>}]} {
    %c0 = arith.constant 0 : index
    %c0_0 = arith.constant 0 : index
    %0 = vector.load %arg1[%c0, %c0_0] : memref<16x128xbf16, #tpu.memory_space<vmem>>, vector<16x128xbf16>
    %c0_1 = arith.constant 0 : index
    %c0_2 = arith.constant 0 : index
    %1 = vector.load %arg2[%c0_1, %c0_2] : memref<128x128xbf16, #tpu.memory_space<vmem>>, vector<128x128xbf16>
    %cst = arith.constant dense<0.000000e+00> : vector<16x128xf32>
    %2 = tpu.matmul %0, %1, %cst {dimension_numbers = #tpu.dot_dimension_numbers<[1], [0], [0], [1], [0, 0, 1, 1], [], []>} : vector<16x128xbf16>, vector<128x128xbf16>, vector<16x128xf32> -> vector<16x128xf32>
    %c0_3 = arith.constant 0 : index
    %c0_4 = arith.constant 0 : index
    %3 = vector.load %arg3[%c0_3, %c0_4] : memref<1x128xf32, #tpu.memory_space<vmem>>, vector<1x128xf32>
    %4 = vector.broadcast %3 : vector<1x128xf32> to vector<16x128xf32>
    %5 = arith.addf %2, %4 : vector<16x128xf32>
    %cst_5 = arith.constant 0.000000e+00 : f32
    %6 = vector.broadcast %cst_5 : f32 to vector<16x128xf32>
    %7 = arith.maximumf %5, %6 : vector<16x128xf32>
    %c0_6 = arith.constant 0 : index
    %c0_7 = arith.constant 0 : index
    %8 = vector.load %arg9[%c0_6, %c0_7] : memref<16x128xf32, #tpu.memory_space<vmem>>, vector<16x128xf32>
    tpu.vector_store %arg9[%c0_6, %c0_7], %7 {strides = array<i32>} : memref<16x128xf32, #tpu.memory_space<vmem>>, vector<16x128xf32>,
    %c0_i32 = arith.constant 0 : i32
    %c0_8 = arith.constant 0 : index
    %c0_9 = arith.constant 0 : index
    %9 = vector.load %arg9[%c0_8, %c0_9] : memref<16x128xf32, #tpu.memory_space<vmem>>, vector<16x128xf32>
    %10 = arith.truncf %9 : vector<16x128xf32> to vector<16x128xbf16>
    %11 = arith.index_cast %c0_i32 : i32 to index
    %c0_10 = arith.constant 0 : index
    %c0_11 = arith.constant 0 : index
    %12 = vector.load %arg4[%11, %c0_10, %c0_11] : memref<3x128x128xbf16, #tpu.memory_space<vmem>>, vector<1x128x128xbf16>
    %13 = vector.shape_cast %12 : vector<1x128x128xbf16> to vector<128x128xbf16>
    %cst_12 = arith.constant dense<0.000000e+00> : vector<16x128xf32>
    %14 = tpu.matmul %10, %13, %cst_12 {dimension_numbers = #tpu.dot_dimension_numbers<[1], [0], [0], [1], [0, 0, 1, 1], [], []>} : vector<16x128xbf16>, vector<128x128xbf16>, vector<16x128xf32> -> vector<16x128xf32>
    %15 = arith.index_cast %c0_i32 : i32 to index
    %c0_13 = arith.constant 0 : index
    %c0_14 = arith.constant 0 : index
    %16 = vector.load %arg5[%15, %c0_13, %c0_14] : memref<3x1x128xf32, #tpu.memory_space<vmem>>, vector<1x1x128xf32>
    %17 = vector.shape_cast %16 : vector<1x1x128xf32> to vector<1x128xf32>
    %18 = vector.broadcast %17 : vector<1x128xf32> to vector<16x128xf32>
    %19 = arith.addf %14, %18 : vector<16x128xf32>
    %cst_15 = arith.constant 0.000000e+00 : f32
    %20 = vector.broadcast %cst_15 : f32 to vector<16x128xf32>
    %21 = arith.maximumf %19, %20 : vector<16x128xf32>
    %22 = arith.addf %9, %21 : vector<16x128xf32>
    %c0_16 = arith.constant 0 : index
    %c0_17 = arith.constant 0 : index
    %23 = vector.load %arg9[%c0_16, %c0_17] : memref<16x128xf32, #tpu.memory_space<vmem>>, vector<16x128xf32>
    tpu.vector_store %arg9[%c0_16, %c0_17], %22 {strides = array<i32>} : memref<16x128xf32, #tpu.memory_space<vmem>>, vector<16x128xf32>,
    %c1_i32 = arith.constant 1 : i32
    %c0_18 = arith.constant 0 : index
    %c0_19 = arith.constant 0 : index
    %24 = vector.load %arg9[%c0_18, %c0_19] : memref<16x128xf32, #tpu.memory_space<vmem>>, vector<16x128xf32>
    %25 = arith.truncf %24 : vector<16x128xf32> to vector<16x128xbf16>
    %26 = arith.index_cast %c1_i32 : i32 to index
    %c0_20 = arith.constant 0 : index
    %c0_21 = arith.constant 0 : index
    %27 = vector.load %arg4[%26, %c0_20, %c0_21] : memref<3x128x128xbf16, #tpu.memory_space<vmem>>, vector<1x128x128xbf16>
    %28 = vector.shape_cast %27 : vector<1x128x128xbf16> to vector<128x128xbf16>
    %cst_22 = arith.constant dense<0.000000e+00> : vector<16x128xf32>
    %29 = tpu.matmul %25, %28, %cst_22 {dimension_numbers = #tpu.dot_dimension_numbers<[1], [0], [0], [1], [0, 0, 1, 1], [], []>} : vector<16x128xbf16>, vector<128x128xbf16>, vector<16x128xf32> -> vector<16x128xf32>
    %30 = arith.index_cast %c1_i32 : i32 to index
    %c0_23 = arith.constant 0 : index
    %c0_24 = arith.constant 0 : index
    %31 = vector.load %arg5[%30, %c0_23, %c0_24] : memref<3x1x128xf32, #tpu.memory_space<vmem>>, vector<1x1x128xf32>
    %32 = vector.shape_cast %31 : vector<1x1x128xf32> to vector<1x128xf32>
    %33 = vector.broadcast %32 : vector<1x128xf32> to vector<16x128xf32>
    %34 = arith.addf %29, %33 : vector<16x128xf32>
    %cst_25 = arith.constant 0.000000e+00 : f32
    %35 = vector.broadcast %cst_25 : f32 to vector<16x128xf32>
    %36 = arith.maximumf %34, %35 : vector<16x128xf32>
    %37 = arith.addf %24, %36 : vector<16x128xf32>
    %c0_26 = arith.constant 0 : index
    %c0_27 = arith.constant 0 : index
    %38 = vector.load %arg9[%c0_26, %c0_27] : memref<16x128xf32, #tpu.memory_space<vmem>>, vector<16x128xf32>
    tpu.vector_store %arg9[%c0_26, %c0_27], %37 {strides = array<i32>} : memref<16x128xf32, #tpu.memory_space<vmem>>, vector<16x128xf32>,
    %c2_i32 = arith.constant 2 : i32
    %c0_28 = arith.constant 0 : index
    %c0_29 = arith.constant 0 : index
    %39 = vector.load %arg9[%c0_28, %c0_29] : memref<16x128xf32, #tpu.memory_space<vmem>>, vector<16x128xf32>
    %40 = arith.truncf %39 : vector<16x128xf32> to vector<16x128xbf16>
    %41 = arith.index_cast %c2_i32 : i32 to index
    %c0_30 = arith.constant 0 : index
    %c0_31 = arith.constant 0 : index
    %42 = vector.load %arg4[%41, %c0_30, %c0_31] : memref<3x128x128xbf16, #tpu.memory_space<vmem>>, vector<1x128x128xbf16>
    %43 = vector.shape_cast %42 : vector<1x128x128xbf16> to vector<128x128xbf16>
    %cst_32 = arith.constant dense<0.000000e+00> : vector<16x128xf32>
    %44 = tpu.matmul %40, %43, %cst_32 {dimension_numbers = #tpu.dot_dimension_numbers<[1], [0], [0], [1], [0, 0, 1, 1], [], []>} : vector<16x128xbf16>, vector<128x128xbf16>, vector<16x128xf32> -> vector<16x128xf32>
    %45 = arith.index_cast %c2_i32 : i32 to index
    %c0_33 = arith.constant 0 : index
    %c0_34 = arith.constant 0 : index
    %46 = vector.load %arg5[%45, %c0_33, %c0_34] : memref<3x1x128xf32, #tpu.memory_space<vmem>>, vector<1x1x128xf32>
    %47 = vector.shape_cast %46 : vector<1x1x128xf32> to vector<1x128xf32>
    %48 = vector.broadcast %47 : vector<1x128xf32> to vector<16x128xf32>
    %49 = arith.addf %44, %48 : vector<16x128xf32>
    %cst_35 = arith.constant 0.000000e+00 : f32
    %50 = vector.broadcast %cst_35 : f32 to vector<16x128xf32>
    %51 = arith.maximumf %49, %50 : vector<16x128xf32>
    %52 = arith.addf %39, %51 : vector<16x128xf32>
    %c0_36 = arith.constant 0 : index
    %c0_37 = arith.constant 0 : index
    %53 = vector.load %arg9[%c0_36, %c0_37] : memref<16x128xf32, #tpu.memory_space<vmem>>, vector<16x128xf32>
    tpu.vector_store %arg9[%c0_36, %c0_37], %52 {strides = array<i32>} : memref<16x128xf32, #tpu.memory_space<vmem>>, vector<16x128xf32>,
    %c3_i32 = arith.constant 3 : i32
    %c0_38 = arith.constant 0 : index
    %c0_39 = arith.constant 0 : index
    %54 = vector.load %arg9[%c0_38, %c0_39] : memref<16x128xf32, #tpu.memory_space<vmem>>, vector<16x128xf32>
    %55 = arith.truncf %54 : vector<16x128xf32> to vector<16x128xbf16>
    %c0_40 = arith.constant 0 : index
    %c0_41 = arith.constant 0 : index
    %56 = vector.load %arg6[%c0_40, %c0_41] : memref<128x128xbf16, #tpu.memory_space<vmem>>, vector<128x128xbf16>
    %cst_42 = arith.constant dense<0.000000e+00> : vector<16x128xf32>
    %57 = tpu.matmul %55, %56, %cst_42 {dimension_numbers = #tpu.dot_dimension_numbers<[1], [0], [0], [1], [0, 0, 1, 1], [], []>} : vector<16x128xbf16>, vector<128x128xbf16>, vector<16x128xf32> -> vector<16x128xf32>
    %c0_43 = arith.constant 0 : index
    %c0_44 = arith.constant 0 : index
    %58 = vector.load %arg7[%c0_43, %c0_44] : memref<1x128xf32, #tpu.memory_space<vmem>>, vector<1x128xf32>
    %59 = vector.broadcast %58 : vector<1x128xf32> to vector<16x128xf32>
    %60 = arith.addf %57, %59 : vector<16x128xf32>
    %c0_45 = arith.constant 0 : index
    %c0_46 = arith.constant 0 : index
    %61 = vector.load %arg8[%c0_45, %c0_46] : memref<16x128xf32, #tpu.memory_space<vmem>>, vector<16x128xf32>
    tpu.vector_store %arg8[%c0_45, %c0_46], %60 {strides = array<i32>} : memref<16x128xf32, #tpu.memory_space<vmem>>, vector<16x128xf32>,
    return
  }
  func.func @transform_0(%arg0: i32) -> (i32, i32) {
    %c0_i32 = arith.constant 0 : i32
    %c0_i32_0 = arith.constant 0 : i32
    return %arg0, %c0_i32 : i32, i32
  }
  func.func @transform_1(%arg0: i32) -> (i32, i32) {
    %c0_i32 = arith.constant 0 : i32
    %c0_i32_0 = arith.constant 0 : i32
    %c0_i32_1 = arith.constant 0 : i32
    return %c0_i32, %c0_i32_0 : i32, i32
  }
  func.func @transform_2(%arg0: i32) -> (i32, i32) {
    %c0_i32 = arith.constant 0 : i32
    %c0_i32_0 = arith.constant 0 : i32
    %c0_i32_1 = arith.constant 0 : i32
    return %c0_i32, %c0_i32_0 : i32, i32
  }
  func.func @transform_3(%arg0: i32) -> (i32, i32, i32) {
    %c0_i32 = arith.constant 0 : i32
    %c0_i32_0 = arith.constant 0 : i32
    %c0_i32_1 = arith.constant 0 : i32
    %c0_i32_2 = arith.constant 0 : i32
    return %c0_i32, %c0_i32_0, %c0_i32_1 : i32, i32, i32
  }
  func.func @transform_4(%arg0: i32) -> (i32, i32, i32) {
    %c0_i32 = arith.constant 0 : i32
    %c0_i32_0 = arith.constant 0 : i32
    %c0_i32_1 = arith.constant 0 : i32
    %c0_i32_2 = arith.constant 0 : i32
    return %c0_i32, %c0_i32_0, %c0_i32_1 : i32, i32, i32
  }
  func.func @transform_5(%arg0: i32) -> (i32, i32) {
    %c0_i32 = arith.constant 0 : i32
    %c0_i32_0 = arith.constant 0 : i32
    %c0_i32_1 = arith.constant 0 : i32
    return %c0_i32, %c0_i32_0 : i32, i32
  }
  func.func @transform_6(%arg0: i32) -> (i32, i32) {
    %c0_i32 = arith.constant 0 : i32
    %c0_i32_0 = arith.constant 0 : i32
    %c0_i32_1 = arith.constant 0 : i32
    return %c0_i32, %c0_i32_0 : i32, i32
  }
  func.func @transform_7(%arg0: i32) -> (i32, i32) {
    %c0_i32 = arith.constant 0 : i32
    %c0_i32_0 = arith.constant 0 : i32
    return %arg0, %c0_i32 : i32, i32
  }
}

</mosaic_0001>

<bundles_post_ra>
// kernel: _forward_impl.1
= control target key start
LH: loop header
LB: loop body
LE: loop exit
PB: predicated region body
PF: predicated region fallthrough
CT: control target
= control target key end

     0   :  { %12 = vsyncpa [#allocation4], 0  ;;  %s1117_s0 = inlined_call_operand.vmem [shape: bf16[16,128], index: 0, kind: input, shape index: {}]   ;;  %s1118_s1 = inlined_call_operand.hbm [shape: bf16[128,128], index: 1, kind: input, shape index: {}]   ;;  %s1119_s2 = inlined_call_operand.vmem [shape: f32[1,128], index: 2, kind: input, shape index: {}]   ;;  %s1120_s3 = inlined_call_operand.hbm [shape: bf16[3,128,128], index: 3, kind: input, shape index: {}]   ;;  %s1121_s4 = inlined_call_operand.vmem [shape: f32[3,1,128], index: 4, kind: input, shape index: {}]   ;;  %s1122_s5 = inlined_call_operand.hbm [shape: bf16[128,128], index: 5, kind: input, shape index: {}]   ;;  %s1123_s6 = inlined_call_operand.vmem [shape: f32[1,128], index: 6, kind: input, shape index: {}]   ;;  %s1124_s7 = inlined_call_operand.vmem [shape: f32[16,128], index: 7, kind: output, shape index: {}]  }
   0x1   :  { %13 = vsyncpa [#allocation6], 0  ;;  %s987_s24 = smov [#allocation5]   ;;  %s988_s26 = smov [#allocation3]  }
   0x2   :  { %s35_s25 = sshll.u32 %s987_s24, 4  ;;  %s21_s27 = sshll.u32 %s988_s26, 4  ;;  %s36_s25 = int_to_ptr.vmem [resolvable:$true] %s35_s25  ;;  %s22_s27 = int_to_ptr.vmem [resolvable:$true] %s21_s27 }
   0x3   :  { %s931_s28 = scalar_lea.vmem %s36_s25, 3072  ;;  %p936_p1 = scmp.lt.s32.totalorder %s36_s25, %s36_s25 }
   0x4   :  { %p932_p0 = scmp.ne.s32.totalorder %s36_s25, %s931_s28  ;;  %p937_p2 = scmp.lt.s32.totalorder %s931_s28, %s931_s28 }
   0x6   :  { %p938_p3 = por %p937_p2, %p936_p1 }
   0x8   :  { %p939_p4 = pnand %p938_p3, %p932_p0 }
   0xa   :  { %942 = shalt.err (!%p939_p4)
}
   0xb   :  { %s989_s29 = smov 64   ;;  %s990_s30 = smov 4  }
   0xc   :  { %41 = dma.hbm_to_vmem [thread:$0]  %s1120_s3, 3072, %s36_s25, [#allocation6], %s989_s29, %s989_s29, %s990_s30  }
   0xd   :  { %s951_s10 = scalar_lea.vmem %s22_s27, 1024  ;;  %p956_p6 = scmp.lt.s32.totalorder %s22_s27, %s22_s27 }
   0xe   :  { %p952_p5 = scmp.ne.s32.totalorder %s22_s27, %s951_s10  ;;  %p957_p7 = scmp.lt.s32.totalorder %s951_s10, %s951_s10 }
  0x10   :  { %p958_p8 = por %p957_p7, %p956_p6 }
  0x12   :  { %p959_p9 = pnand %p958_p8, %p952_p5 }
  0x14   :  { %962 = shalt.err (!%p959_p9)
}
  0x15   :  { %27 = dma.hbm_to_vmem [thread:$0]  %s1118_s1, 1024, %s22_s27, [#allocation4], %s989_s29, %s989_s29, %s990_s30  }
  0x16   :  { %s991_s13 = smov [#allocation7]  }
  0x17   :  { %s49_s14 = sshll.u32 %s991_s13, 4  ;;  %s50_s14 = int_to_ptr.vmem [resolvable:$true] %s49_s14 }
  0x18   :  { %s971_s15 = scalar_lea.vmem %s50_s14, 1024  ;;  %p976_p11 = scmp.lt.s32.totalorder %s50_s14, %s50_s14 }
  0x19   :  { %p972_p10 = scmp.ne.s32.totalorder %s50_s14, %s971_s15  ;;  %p977_p12 = scmp.lt.s32.totalorder %s971_s15, %s971_s15 }
  0x1b   :  { %p978_p13 = por %p977_p12, %p976_p11 }
  0x1d   :  { %p979_p0 = pnand %p978_p13, %p972_p10 }
  0x1f   :  { %982 = shalt.err (!%p979_p0)
}
  0x20   :  { %55 = dma.hbm_to_vmem [thread:$0]  %s1122_s5, 1024, %s50_s14, [#allocation6], %s989_s29, %s989_s29, %s990_s30  }
  0x21   :  { %983 = dma.done.wait [#allocation4], 1024  }
  0x22   :  { %984 = vsyncadd [#allocation4], 4294966272 }
  0x23   :  { %985 = dma.done.wait [#allocation6], 4096  }
  0x24   :  { %986 = vsyncadd [#allocation6], 4294963200  ;;  %v992_v0 = vmov 0.0   ;;  %vm993_vm0 = vmmov 0   ;;  %v882_v1 = vld [vmem:[#allocation3 + $0x38] sm:$0xff]   ;;  %v883_v2 = vld [vmem:[#allocation3 + $0x30] sm:$0xff]  }
  0x25   :  { %775 = vmatprep.subr.bf16.mxu0 %v992_v0  ;;  %791 = vmatprep.mubr.msk.bf16.mxu0 %vm993_vm0, %v992_v0  ;;  %v884_v3 = vld [vmem:[#allocation3 + $0x28] sm:$0xff]   ;;  %v891_v4 = vld [vmem:[#allocation5 + $0x38] sm:$0xff]   ;;  %v885_v5 = vld [vmem:[#allocation3 + $0x20] sm:$0xff]  }
  0x26   :  { %795 = vmatprep.subr.bf16.mxu1 %v992_v0  ;;  %811 = vmatprep.mubr.msk.bf16.mxu1 %vm993_vm0, %v992_v0  ;;  %v892_v6 = vld [vmem:[#allocation5 + $0x30] sm:$0xff]   ;;  %v886_v7 = vld [vmem:[#allocation3 + $0x18] sm:$0xff]   ;;  %v893_v8 = vld [vmem:[#allocation5 + $0x28] sm:$0xff]  }
  0x27   :  { %776 = vmatpush3.bf16.msra.mxu0 %v882_v1  ;;  %796 = vmatpush3.bf16.msra.mxu1 %v891_v4  ;;  %v887_v9 = vld [vmem:[#allocation3 + $0x10] sm:$0xff]   ;;  %v894_v10 = vld [vmem:[#allocation5 + $0x20] sm:$0xff]   ;;  %v888_v11 = vld [vmem:[#allocation3 + $0x8] sm:$0xff]  }
  0x28   :  { %777 = vmatprep.subr.bf16.mxu0 %v992_v0  ;;  %797 = vmatprep.subr.bf16.mxu1 %v992_v0  ;;  %v895_v12 = vld [vmem:[#allocation5 + $0x18] sm:$0xff]   ;;  %v889_v13 = vld [vmem:[#allocation3] sm:$0xff]   ;;  %v896_v15 = vld [vmem:[#allocation5 + $0x10] sm:$0xff]  }
  0x29   :  { %v890_v14 = vld [vmem:[%s1117_s0] sm:$0xff]   ;;  %v897_v16 = vld [vmem:[#allocation5 + $0x8] sm:$0xff]   ;;  %v899_v18 = vld [vmem:[#allocation5 + $0x78] sm:$0xff]  }
  0x2a   :  { %v898_v17 = vld [vmem:[#allocation5] sm:$0xff]   ;;  %v900_v19 = vld [vmem:[#allocation5 + $0x70] sm:$0xff]   ;;  %v901_v20 = vld [vmem:[#allocation5 + $0x68] sm:$0xff]  }
  0x2b   :  { %778 = vmatpush3.bf16.msra.mxu0 %v883_v2  ;;  %798 = vmatpush3.bf16.msra.mxu1 %v892_v6  ;;  %v902_v21 = vld [vmem:[#allocation5 + $0x60] sm:$0xff]   ;;  %v903_v22 = vld [vmem:[#allocation5 + $0x58] sm:$0xff]   ;;  %v904_v33 = vld [vmem:[#allocation5 + $0x50] sm:$0xff]  }
  0x2c   :  { %779 = vmatprep.subr.bf16.mxu0 %v992_v0  ;;  %799 = vmatprep.subr.bf16.mxu1 %v992_v0  ;;  %v682_v23 = vld [vmem:[%s1119_s2] ss:$0 sm:$0xff]  ;;  %v905_v34 = vld [vmem:[#allocation5 + $0x48] sm:$0xff]   ;;  %v907_v36 = vld [vmem:[#allocation5 + $0xb8] sm:$0xff]  }
  0x2d   :  { %v906_v35 = vld [vmem:[#allocation5 + $0x40] sm:$0xff]   ;;  %v908_v37 = vld [vmem:[#allocation5 + $0xb0] sm:$0xff]   ;;  %v909_v38 = vld [vmem:[#allocation5 + $0xa8] sm:$0xff]  }
  0x2e   :  { %v910_v39 = vld [vmem:[#allocation5 + $0xa0] sm:$0xff]   ;;  %v911_v40 = vld [vmem:[#allocation5 + $0x98] sm:$0xff]   ;;  %v912_v53 = vld [vmem:[#allocation5 + $0x90] sm:$0xff]  }
  0x2f   :  { %780 = vmatpush3.bf16.msra.mxu0 %v884_v3  ;;  %800 = vmatpush3.bf16.msra.mxu1 %v893_v8  ;;  %v692_v41 = vld [vmem:[%s1121_s4] ss:$0 sm:$0xff]  ;;  %v913_v54 = vld [vmem:[#allocation5 + $0x88] sm:$0xff]   ;;  %v915_v56 = vld [vmem:[#allocation7 + $0x38] sm:$0xff]  }
  0x30   :  { %781 = vmatprep.subr.bf16.mxu0 %v992_v0  ;;  %801 = vmatprep.subr.bf16.mxu1 %v992_v0  ;;  %v914_v55 = vld [vmem:[#allocation5 + $0x80] sm:$0xff]   ;;  %v916_v57 = vld [vmem:[#allocation7 + $0x30] sm:$0xff]   ;;  %v917_v58 = vld [vmem:[#allocation7 + $0x28] sm:$0xff]  }
  0x31   :  { %v918_v59 = vld [vmem:[#allocation7 + $0x20] sm:$0xff]   ;;  %v919_v60 = vld [vmem:[#allocation7 + $0x18] sm:$0xff]  }
  0x32   :  { %v702_v61 = vld [vmem:[%s1121_s4 + $0x1] ss:$0 sm:$0xff] }
  0x33   :  { %782 = vmatpush3.bf16.msra.mxu0 %v885_v5  ;;  %802 = vmatpush3.bf16.msra.mxu1 %v894_v10  ;;  %v920_v10 = vld [vmem:[#allocation7 + $0x10] sm:$0xff]  }
  0x34   :  { %783 = vmatprep.subr.bf16.mxu0 %v992_v0  ;;  %803 = vmatprep.subr.bf16.mxu1 %v992_v0 }
  0x37   :  { %784 = vmatpush3.bf16.msra.mxu0 %v886_v7  ;;  %804 = vmatpush3.bf16.msra.mxu1 %v895_v12  ;;  %v922_v12 = vld [vmem:[#allocation7] sm:$0xff]  }
  0x38   :  { %785 = vmatprep.subr.bf16.mxu0 %v992_v0  ;;  %805 = vmatprep.subr.bf16.mxu1 %v992_v0 }
  0x3b   :  { %786 = vmatpush3.bf16.msra.mxu0 %v887_v9  ;;  %806 = vmatpush3.bf16.msra.mxu1 %v896_v15 }
  0x3c   :  { %787 = vmatprep.subr.bf16.mxu0 %v992_v0  ;;  %807 = vmatprep.subr.bf16.mxu1 %v992_v0 }
  0x3f   :  { %788 = vmatpush3.bf16.msra.mxu0 %v888_v11  ;;  %808 = vmatpush3.bf16.msra.mxu1 %v897_v16  ;;  %v921_v11 = vld [vmem:[#allocation7 + $0x8] sm:$0xff]  }
  0x40   :  { %789 = vmatprep.subr.bf16.mxu0 %v992_v0  ;;  %809 = vmatprep.subr.bf16.mxu1 %v992_v0 }
  0x43   :  { %790 = vmatpush3.bf16.msra.mxu0 %v889_v13  ;;  %810 = vmatpush3.bf16.msra.mxu1 %v898_v17  ;;  %v712_v13 = vld [vmem:[%s1121_s4 + $0x2] ss:$0 sm:$0xff] }
  0x44   :  { %815 = vmatprep.subr.bf16.mxu0 %v992_v0  ;;  %835 = vmatprep.subr.bf16.mxu1 %v992_v0 }
  0x46   :  { %792 = vmatmul.mubr.bf16.vlgmr.msra.gmra.mxu0 %v890_v14 }
  0x47   :  { %831 = vmatprep.mubr.msk.bf16.mxu0 %vm993_vm0, %v992_v0  ;;  %816 = vmatpush3.bf16.msra.mxu0 %v899_v18 }
  0x48   :  { %817 = vmatprep.subr.bf16.mxu0 %v992_v0 }
  0x4b   :  { %818 = vmatpush3.bf16.msra.mxu0 %v900_v19 }
  0x4c   :  { %819 = vmatprep.subr.bf16.mxu0 %v992_v0 }
  0x4f   :  { %820 = vmatpush3.bf16.msra.mxu0 %v901_v20 }
  0x50   :  { %821 = vmatprep.subr.bf16.mxu0 %v992_v0 }
  0x53   :  { %822 = vmatpush3.bf16.msra.mxu0 %v902_v21 }
  0x54   :  { %823 = vmatprep.subr.bf16.mxu0 %v992_v0 }
  0x57   :  { %824 = vmatpush3.bf16.msra.mxu0 %v903_v22 }
  0x58   :  { %825 = vmatprep.subr.bf16.mxu0 %v992_v0 }
  0x5b   :  { %826 = vmatpush3.bf16.msra.mxu0 %v904_v33 }
  0x5c   :  { %827 = vmatprep.subr.bf16.mxu0 %v992_v0 }
  0x5f   :  { %828 = vmatpush3.bf16.msra.mxu0 %v905_v34 }
  0x60   :  { %829 = vmatprep.subr.bf16.mxu0 %v992_v0 }
  0x63   :  { %830 = vmatpush3.bf16.msra.mxu0 %v906_v35 }
  0x64   :  { %855 = vmatprep.subr.bf16.mxu0 %v992_v0 }
 0x106   :  { %v181_v24 = vpop.f32.mrf.mxu0 }
 0x107   :  { %v182_v26 = vadd.f32 %v682_v23, %v181_v24 }
 0x108   :  { %v793_v25 = vpop.f32.mrf.mxu0 }
 0x109   :  { %v188_v30 = vmax.f32 %v182_v26, 0.0 }
 0x10a   :  { %v184_v27 = vpop.f32.mrf.mxu0 }
 0x10b   :  { %v185_v28 = vadd.f32 %v682_v23, %v184_v27 }
 0x10c   :  { %v794_v29 = vpop.f32.mrf.mxu0 }
 0x10d   :  { %v189_v31 = vmax.f32 %v185_v28, 0.0 }
 0x10f   :  { %v194_v32 = vpack.c.bf16 %v189_v31, %v188_v30 }
 0x111   :  { %812 = vmatmul.mubr.bf16.vlgmr.msra.gmra.mxu1 %v194_v32 }
 0x112   :  { %851 = vmatprep.mubr.msk.bf16.mxu1 %vm993_vm0, %v992_v0  ;;  %836 = vmatpush3.bf16.msra.mxu1 %v907_v36 }
 0x113   :  { %837 = vmatprep.subr.bf16.mxu1 %v992_v0 }
 0x116   :  { %838 = vmatpush3.bf16.msra.mxu1 %v908_v37 }
 0x117   :  { %839 = vmatprep.subr.bf16.mxu1 %v992_v0 }
 0x11a   :  { %840 = vmatpush3.bf16.msra.mxu1 %v909_v38 }
 0x11b   :  { %841 = vmatprep.subr.bf16.mxu1 %v992_v0 }
 0x11e   :  { %842 = vmatpush3.bf16.msra.mxu1 %v910_v39 }
 0x11f   :  { %843 = vmatprep.subr.bf16.mxu1 %v992_v0 }
 0x122   :  { %844 = vmatpush3.bf16.msra.mxu1 %v911_v40 }
 0x123   :  { %845 = vmatprep.subr.bf16.mxu1 %v992_v0 }
 0x126   :  { %846 = vmatpush3.bf16.msra.mxu1 %v912_v53 }
 0x127   :  { %847 = vmatprep.subr.bf16.mxu1 %v992_v0 }
 0x12a   :  { %848 = vmatpush3.bf16.msra.mxu1 %v913_v54 }
 0x12b   :  { %849 = vmatprep.subr.bf16.mxu1 %v992_v0 }
 0x12e   :  { %850 = vmatpush3.bf16.msra.mxu1 %v914_v55 }
 0x1d1   :  { %v300_v42 = vpop.f32.mrf.mxu1 }
 0x1d2   :  { %v301_v43 = vadd.f32 %v692_v41, %v300_v42 }
 0x1d3   :  { %v813_v44 = vpop.f32.mrf.mxu1 }
 0x1d4   :  { %v307_v46 = vmax.f32 %v301_v43, 0.0 }
 0x1d5   :  { %v303_v45 = vpop.f32.mrf.mxu1 }
 0x1d6   :  { %v304_v47 = vadd.f32 %v692_v41, %v303_v45  ;;  %v309_v50 = vadd.f32 %v307_v46, %v188_v30 }
 0x1d7   :  { %v814_v48 = vpop.f32.mrf.mxu1 }
 0x1d8   :  { %v308_v49 = vmax.f32 %v304_v47, 0.0 }
 0x1da   :  { %v310_v51 = vadd.f32 %v308_v49, %v189_v31 }
 0x1dc   :  { %v315_v52 = vpack.c.bf16 %v310_v51, %v309_v50 }
 0x1de   :  { %832 = vmatmul.mubr.bf16.vlgmr.msra.gmra.mxu0 %v315_v52 }
 0x1df   :  { %871 = vmatprep.mubr.msk.bf16.mxu0 %vm993_vm0, %v992_v0  ;;  %856 = vmatpush3.bf16.msra.mxu0 %v915_v56 }
 0x1e0   :  { %857 = vmatprep.subr.bf16.mxu0 %v992_v0 }
 0x1e3   :  { %858 = vmatpush3.bf16.msra.mxu0 %v916_v57 }
 0x1e4   :  { %859 = vmatprep.subr.bf16.mxu0 %v992_v0 }
 0x1e7   :  { %860 = vmatpush3.bf16.msra.mxu0 %v917_v58 }
 0x1e8   :  { %861 = vmatprep.subr.bf16.mxu0 %v992_v0 }
 0x1eb   :  { %862 = vmatpush3.bf16.msra.mxu0 %v918_v59 }
 0x1ec   :  { %863 = vmatprep.subr.bf16.mxu0 %v992_v0 }
 0x1ef   :  { %864 = vmatpush3.bf16.msra.mxu0 %v919_v60 }
 0x1f0   :  { %865 = vmatprep.subr.bf16.mxu0 %v992_v0 }
 0x1f3   :  { %866 = vmatpush3.bf16.msra.mxu0 %v920_v10 }
 0x1f4   :  { %867 = vmatprep.subr.bf16.mxu0 %v992_v0 }
 0x1f7   :  { %868 = vmatpush3.bf16.msra.mxu0 %v921_v11 }
 0x1f8   :  { %869 = vmatprep.subr.bf16.mxu0 %v992_v0  ;;  %v721_v0 = vld [vmem:[%s1123_s6] ss:$0 sm:$0xff] }
 0x1fb   :  { %870 = vmatpush3.bf16.msra.mxu0 %v922_v12 }
 0x29e   :  { %v423_v62 = vpop.f32.mrf.mxu0 }
 0x29f   :  { %v424_v63 = vadd.f32 %v702_v61, %v423_v62 }
 0x2a0   :  { %v833_v1 = vpop.f32.mrf.mxu0 }
 0x2a1   :  { %v430_v3 = vmax.f32 %v424_v63, 0.0 }
 0x2a2   :  { %v426_v2 = vpop.f32.mrf.mxu0 }
 0x2a3   :  { %v427_v4 = vadd.f32 %v702_v61, %v426_v2  ;;  %v432_v7 = vadd.f32 %v430_v3, %v309_v50 }
 0x2a4   :  { %v834_v5 = vpop.f32.mrf.mxu0 }
 0x2a5   :  { %v431_v6 = vmax.f32 %v427_v4, 0.0 }
 0x2a7   :  { %v433_v8 = vadd.f32 %v431_v6, %v310_v51 }
 0x2a9   :  { %v438_v9 = vpack.c.bf16 %v433_v8, %v432_v7 }
 0x2ab   :  { %852 = vmatmul.mubr.bf16.vlgmr.msra.gmra.mxu1 %v438_v9 }
 0x36b   :  { %v546_v14 = vpop.f32.mrf.mxu1 }
 0x36c   :  { %v547_v15 = vadd.f32 %v712_v13, %v546_v14 }
 0x36d   :  { %v853_v16 = vpop.f32.mrf.mxu1 }
 0x36e   :  { %v553_v18 = vmax.f32 %v547_v15, 0.0 }
 0x36f   :  { %v549_v17 = vpop.f32.mrf.mxu1 }
 0x370   :  { %v550_v19 = vadd.f32 %v712_v13, %v549_v17  ;;  %v555_v22 = vadd.f32 %v553_v18, %v432_v7 }
 0x371   :  { %v854_v20 = vpop.f32.mrf.mxu1 }
 0x372   :  { %v554_v21 = vmax.f32 %v550_v19, 0.0 }
 0x374   :  { %v556_v23 = vadd.f32 %v554_v21, %v433_v8 }
 0x376   :  { %v561_v24 = vpack.c.bf16 %v556_v23, %v555_v22 }
 0x378   :  { %872 = vmatmul.mubr.bf16.vlgmr.msra.gmra.mxu0 %v561_v24 }
 0x438   :  { %v667_v25 = vpop.f32.mrf.mxu0 }
 0x439   :  { %v668_v26 = vadd.f32 %v721_v0, %v667_v25 }
 0x43a   :  { %v873_v27 = vpop.f32.mrf.mxu0 }
 0x43b   :  { %674 = vst [vmem:[%s1124_s7] sm:$0xff] %v668_v26 }
 0x43c   :  { %v670_v28 = vpop.f32.mrf.mxu0 }
 0x43d   :  { %v671_v29 = vadd.f32 %v721_v0, %v670_v28 }
 0x43e   :  { %v874_v30 = vpop.f32.mrf.mxu0 }
 0x43f   :  { %675 = vst [vmem:[%s1124_s7 + $0x8] sm:$0xff] %v671_v29 }
 0x440   :  { %680 = vsyncpa [#allocation4], 1 }
 0x441   :  { %681 = vsyncpa [#allocation6], 1 }

</bundles_post_ra>
